<compile_context>
chip_gen: v5e
topology: v5e:2x2
jax: 0.10.0
libtpu: 0.0.40
codegen_flags: <defaults>
</compile_context>

<pallas_src>
import functools

import jax
import jax.numpy as jnp
from jax.experimental import pallas as pl
from jax.experimental.pallas import tpu as pltpu

LANE = 128


def _round_up(n, m):
    return ((n + m - 1) // m) * m


def dqn_mlp_kernel(x_ref, w1_ref, b1_ref, w2_ref, b2_ref, w3_ref, b3_ref, o_ref):
    """Fused 3-layer MLP for one batch tile.

    f32 input cast to bf16 in-kernel, bf16 MXU matmuls with f32 accumulation,
    f32 bias-add + ReLU epilogue (v5e has no bf16 VPU), bf16 lane-dense store.
    """
    x = x_ref[...].astype(jnp.bfloat16)

    # Layer 1: Linear + ReLU
    h1 = jnp.dot(x, w1_ref[...], preferred_element_type=jnp.float32)
    h1 = jnp.maximum(h1 + b1_ref[...], 0.0)

    # Layer 2: Linear + ReLU (hidden dim lane-padded to 128 in prepare_params)
    h2 = jnp.dot(h1.astype(jnp.bfloat16), w2_ref[...],
                 preferred_element_type=jnp.float32)
    h2 = jnp.maximum(h2 + b2_ref[...], 0.0)

    # Output layer: Linear (no activation); columns lane-padded to 128.
    out = jnp.dot(h2.astype(jnp.bfloat16), w3_ref[...],
                  preferred_element_type=jnp.float32)
    o_ref[...] = (out + b3_ref[...]).astype(o_ref.dtype)


def prepare_params(params):
    """One-time prep: zero-pad hidden/output dims to 128 lanes, cast weights to bf16.

    Returns (prepared_params, out_dim).  Do this once, outside the per-step path.
    """
    w1, b1 = params["w1"], params["b1"]
    w2, b2 = params["w2"], params["b2"]
    w3, b3 = params["w3"], params["b3"]
    out_dim = w3.shape[1]

    h1p = _round_up(w1.shape[1], LANE)
    h2p = _round_up(w2.shape[1], LANE)
    outp = _round_up(out_dim, LANE)

    def pad2(a, rows, cols):
        return jnp.pad(a, ((0, rows - a.shape[0]), (0, cols - a.shape[1])))

    prepped = {
        "w1": pad2(w1, w1.shape[0], h1p).astype(jnp.bfloat16),
        "b1": pad2(b1, 1, h1p),
        "w2": pad2(w2, h1p, h2p).astype(jnp.bfloat16),
        "b2": pad2(b2, 1, h2p),
        "w3": pad2(w3, h2p, outp).astype(jnp.bfloat16),
        "b3": pad2(b3, 1, outp),
    }
    return prepped, out_dim


@functools.partial(jax.jit, static_argnames=("out_dim", "block_b"))
def dqn_forward(x, prepped, *, out_dim, block_b=512):
    """x: [B, input_dim] float32. prepped: output of prepare_params. Returns [B, out_dim] f32."""
    w1, b1 = prepped["w1"], prepped["b1"]
    w2, b2 = prepped["w2"], prepped["b2"]
    w3, b3 = prepped["w3"], prepped["b3"]

    B, in_dim = x.shape
    h1_dim = w1.shape[1]
    h2_dim = w2.shape[1]
    out_pad = w3.shape[1]

    # Batch tile: multiple of 8 sublanes, at most block_b rows.
    block_b = _round_up(max(int(block_b), 8), 8)
    b8 = _round_up(B, 8)
    tm = min(block_b, b8)
    # Keep at least 2 grid steps when the batch allows it so both of v7x's
    # TensorCores get work (costs only ~0.35 us extra on single-TC chips).
    if (b8 // tm) < 2 and b8 >= 16:
        tm = _round_up((b8 + 1) // 2, 8)
    b_padded = _round_up(B, tm)
    if b_padded != B:
        x = jnp.pad(x, ((0, b_padded - B), (0, 0)))

    grid = (b_padded // tm,)

    def const_spec(arr):
        # Same block index every grid step -> stays VMEM-resident, no re-DMA.
        return pl.BlockSpec(arr.shape, lambda i: (0,) * arr.ndim)

    flops = 2 * b_padded * (in_dim * h1_dim + h1_dim * h2_dim + h2_dim * out_pad)
    bytes_accessed = (
        b_padded * in_dim * 4                       # x f32 in
        + (w1.size + w2.size + w3.size) * 2         # bf16 weights
        + (b1.size + b2.size + b3.size) * 4         # f32 biases
        + b_padded * out_pad * 2                    # bf16 padded output
    )

    out = pl.pallas_call(
        dqn_mlp_kernel,
        out_shape=jax.ShapeDtypeStruct((b_padded, out_pad), jnp.bfloat16),
        grid=grid,
        in_specs=[
            pl.BlockSpec((tm, in_dim), lambda i: (i, 0)),  # x: tiled over batch
            const_spec(w1), const_spec(b1),                # weights/biases pinned
            const_spec(w2), const_spec(b2),
            const_spec(w3), const_spec(b3),
        ],
        out_specs=pl.BlockSpec((tm, out_pad), lambda i: (i, 0)),
        compiler_params=pltpu.CompilerParams(
            dimension_semantics=("parallel",)),
        cost_estimate=pl.CostEstimate(
            flops=flops, transcendentals=0, bytes_accessed=bytes_accessed),
    )(x, w1, b1, w2, b2, w3, b3)

    return out[:B, :out_dim].astype(jnp.float32)


def init_params(key, input_dim, output_dim, hidden_dims=(128, 64)):
    """Deterministic init matching DQNetwork.__init__ layer shapes (weights stored [in,out])."""
    dims = [input_dim, *hidden_dims, output_dim]
    params = {}
    keys = jax.random.split(key, len(dims) - 1)
    for i, (d_in, d_out) in enumerate(zip(dims[:-1], dims[1:]), start=1):
        # PyTorch nn.Linear default: U(-1/sqrt(in), 1/sqrt(in)) for weight and bias.
        bound = 1.0 / float(jnp.sqrt(jnp.float32(d_in)))
        kw, kb = jax.random.split(keys[i - 1])
        params[f"w{i}"] = jax.random.uniform(kw, (d_in, d_out), jnp.float32,
                                             minval=-bound, maxval=bound)
        params[f"b{i}"] = jax.random.uniform(kb, (1, d_out), jnp.float32,
                                             minval=-bound, maxval=bound)
    return params


def reference_forward(x, params):
    """Reference with the same numerics (bf16 MXU inputs, f32 accumulation, bf16 output round)."""
    def mm(a, b):
        return jnp.dot(a.astype(jnp.bfloat16), b.astype(jnp.bfloat16),
                       preferred_element_type=jnp.float32)

    h = jnp.maximum(mm(x, params["w1"]) + params["b1"], 0.0)
    h = jnp.maximum(mm(h, params["w2"]) + params["b2"], 0.0)
    out = mm(h, params["w3"]) + params["b3"]
    return out.astype(jnp.bfloat16).astype(jnp.float32)


if __name__ == "__main__":
    key = jax.random.PRNGKey(0)
    k_x, k_p = jax.random.split(key)

    # Batch large enough to exercise a 2-step parallel grid; still tiny for a TPU.
    batch, input_dim, output_dim = 256, 32, 16
    x = jax.random.normal(k_x, (batch, input_dim), dtype=jnp.float32)
    params = init_params(k_p, input_dim, output_dim, hidden_dims=(128, 64))

    prepped, out_dim = prepare_params(params)  # one-time pad/cast, outside hot path

    out = dqn_forward(x, prepped, out_dim=out_dim)
    out = jax.block_until_ready(out)

    ref = reference_forward(x, params)
    assert out.shape == (batch, output_dim)
    assert out.dtype == jnp.float32
    assert jnp.allclose(out, ref, atol=1e-2, rtol=1e-2), "mismatch vs reference"

    print("KERNEL_OK")
</pallas_src>

<mosaic_0001>
module attributes {stable_mosaic.version = 11 : i64} {
  func.func @dqn_mlp_kernel(%arg0: i32, %arg1: memref<128x32xf32, #tpu.memory_space<vmem>>, %arg2: memref<32x128xbf16, #tpu.memory_space<vmem>>, %arg3: memref<1x128xf32, #tpu.memory_space<vmem>>, %arg4: memref<128x128xbf16, #tpu.memory_space<vmem>>, %arg5: memref<1x128xf32, #tpu.memory_space<vmem>>, %arg6: memref<128x128xbf16, #tpu.memory_space<vmem>>, %arg7: memref<1x128xf32, #tpu.memory_space<vmem>>, %arg8: memref<128x128xbf16, #tpu.memory_space<vmem>>) attributes {dimension_semantics = [#tpu.dimension_semantics<parallel>], iteration_bounds = array<i64: 2>, scalar_prefetch = 0 : i64, scratch_operands = 0 : i64, tpu.core_type = #tpu.core_type<tc>, window_params = [{transform_indices = @transform_0, window_bounds = array<i64: 128, 32>}, {pipeline_mode = #tpu.pipeline_mode<synchronous>, transform_indices = @transform_1, window_bounds = array<i64: 32, 128>}, {pipeline_mode = #tpu.pipeline_mode<synchronous>, transform_indices = @transform_2, window_bounds = array<i64: 1, 128>}, {pipeline_mode = #tpu.pipeline_mode<synchronous>, transform_indices = @transform_3, window_bounds = array<i64: 128, 128>}, {pipeline_mode = #tpu.pipeline_mode<synchronous>, transform_indices = @transform_4, window_bounds = array<i64: 1, 128>}, {pipeline_mode = #tpu.pipeline_mode<synchronous>, transform_indices = @transform_5, window_bounds = array<i64: 128, 128>}, {pipeline_mode = #tpu.pipeline_mode<synchronous>, transform_indices = @transform_6, window_bounds = array<i64: 1, 128>}, {transform_indices = @transform_7, window_bounds = array<i64: 128, 128>}]} {
    %c0 = arith.constant 0 : index
    %c0_0 = arith.constant 0 : index
    %0 = vector.load %arg1[%c0, %c0_0] : memref<128x32xf32, #tpu.memory_space<vmem>>, vector<128x32xf32>
    %1 = arith.truncf %0 : vector<128x32xf32> to vector<128x32xbf16>
    %c0_1 = arith.constant 0 : index
    %c0_2 = arith.constant 0 : index
    %2 = vector.load %arg2[%c0_1, %c0_2] : memref<32x128xbf16, #tpu.memory_space<vmem>>, vector<32x128xbf16>
    %cst = arith.constant dense<0.000000e+00> : vector<128x128xf32>
    %3 = tpu.matmul %1, %2, %cst {dimension_numbers = #tpu.dot_dimension_numbers<[1], [0], [0], [1], [0, 0, 1, 1], [], []>} : vector<128x32xbf16>, vector<32x128xbf16>, vector<128x128xf32> -> vector<128x128xf32>
    %c0_3 = arith.constant 0 : index
    %c0_4 = arith.constant 0 : index
    %4 = vector.load %arg3[%c0_3, %c0_4] : memref<1x128xf32, #tpu.memory_space<vmem>>, vector<1x128xf32>
    %5 = vector.broadcast %4 : vector<1x128xf32> to vector<128x128xf32>
    %6 = arith.addf %3, %5 : vector<128x128xf32>
    %cst_5 = arith.constant 0.000000e+00 : f32
    %7 = vector.broadcast %cst_5 : f32 to vector<128x128xf32>
    %8 = arith.maximumf %6, %7 : vector<128x128xf32>
    %9 = arith.truncf %8 : vector<128x128xf32> to vector<128x128xbf16>
    %c0_6 = arith.constant 0 : index
    %c0_7 = arith.constant 0 : index
    %10 = vector.load %arg4[%c0_6, %c0_7] : memref<128x128xbf16, #tpu.memory_space<vmem>>, vector<128x128xbf16>
    %cst_8 = arith.constant dense<0.000000e+00> : vector<128x128xf32>
    %11 = tpu.matmul %9, %10, %cst_8 {dimension_numbers = #tpu.dot_dimension_numbers<[1], [0], [0], [1], [0, 0, 1, 1], [], []>} : vector<128x128xbf16>, vector<128x128xbf16>, vector<128x128xf32> -> vector<128x128xf32>
    %c0_9 = arith.constant 0 : index
    %c0_10 = arith.constant 0 : index
    %12 = vector.load %arg5[%c0_9, %c0_10] : memref<1x128xf32, #tpu.memory_space<vmem>>, vector<1x128xf32>
    %13 = vector.broadcast %12 : vector<1x128xf32> to vector<128x128xf32>
    %14 = arith.addf %11, %13 : vector<128x128xf32>
    %cst_11 = arith.constant 0.000000e+00 : f32
    %15 = vector.broadcast %cst_11 : f32 to vector<128x128xf32>
    %16 = arith.maximumf %14, %15 : vector<128x128xf32>
    %17 = arith.truncf %16 : vector<128x128xf32> to vector<128x128xbf16>
    %c0_12 = arith.constant 0 : index
    %c0_13 = arith.constant 0 : index
    %18 = vector.load %arg6[%c0_12, %c0_13] : memref<128x128xbf16, #tpu.memory_space<vmem>>, vector<128x128xbf16>
    %cst_14 = arith.constant dense<0.000000e+00> : vector<128x128xf32>
    %19 = tpu.matmul %17, %18, %cst_14 {dimension_numbers = #tpu.dot_dimension_numbers<[1], [0], [0], [1], [0, 0, 1, 1], [], []>} : vector<128x128xbf16>, vector<128x128xbf16>, vector<128x128xf32> -> vector<128x128xf32>
    %c0_15 = arith.constant 0 : index
    %c0_16 = arith.constant 0 : index
    %20 = vector.load %arg7[%c0_15, %c0_16] : memref<1x128xf32, #tpu.memory_space<vmem>>, vector<1x128xf32>
    %21 = vector.broadcast %20 : vector<1x128xf32> to vector<128x128xf32>
    %22 = arith.addf %19, %21 : vector<128x128xf32>
    %23 = arith.truncf %22 : vector<128x128xf32> to vector<128x128xbf16>
    %c0_17 = arith.constant 0 : index
    %c0_18 = arith.constant 0 : index
    %24 = vector.load %arg8[%c0_17, %c0_18] : memref<128x128xbf16, #tpu.memory_space<vmem>>, vector<128x128xbf16>
    tpu.vector_store %arg8[%c0_17, %c0_18], %23 {strides = array<i32>} : memref<128x128xbf16, #tpu.memory_space<vmem>>, vector<128x128xbf16>,
    return
  }
  func.func @transform_0(%arg0: i32) -> (i32, i32) {
    %c0_i32 = arith.constant 0 : i32
    %c0_i32_0 = arith.constant 0 : i32
    return %arg0, %c0_i32 : i32, i32
  }
  func.func @transform_1(%arg0: i32) -> (i32, i32) {
    %c0_i32 = arith.constant 0 : i32
    %c0_i32_0 = arith.constant 0 : i32
    %c0_i32_1 = arith.constant 0 : i32
    return %c0_i32, %c0_i32_0 : i32, i32
  }
  func.func @transform_2(%arg0: i32) -> (i32, i32) {
    %c0_i32 = arith.constant 0 : i32
    %c0_i32_0 = arith.constant 0 : i32
    %c0_i32_1 = arith.constant 0 : i32
    return %c0_i32, %c0_i32_0 : i32, i32
  }
  func.func @transform_3(%arg0: i32) -> (i32, i32) {
    %c0_i32 = arith.constant 0 : i32
    %c0_i32_0 = arith.constant 0 : i32
    %c0_i32_1 = arith.constant 0 : i32
    return %c0_i32, %c0_i32_0 : i32, i32
  }
  func.func @transform_4(%arg0: i32) -> (i32, i32) {
    %c0_i32 = arith.constant 0 : i32
    %c0_i32_0 = arith.constant 0 : i32
    %c0_i32_1 = arith.constant 0 : i32
    return %c0_i32, %c0_i32_0 : i32, i32
  }
  func.func @transform_5(%arg0: i32) -> (i32, i32) {
    %c0_i32 = arith.constant 0 : i32
    %c0_i32_0 = arith.constant 0 : i32
    %c0_i32_1 = arith.constant 0 : i32
    return %c0_i32, %c0_i32_0 : i32, i32
  }
  func.func @transform_6(%arg0: i32) -> (i32, i32) {
    %c0_i32 = arith.constant 0 : i32
    %c0_i32_0 = arith.constant 0 : i32
    %c0_i32_1 = arith.constant 0 : i32
    return %c0_i32, %c0_i32_0 : i32, i32
  }
  func.func @transform_7(%arg0: i32) -> (i32, i32) {
    %c0_i32 = arith.constant 0 : i32
    %c0_i32_0 = arith.constant 0 : i32
    return %arg0, %c0_i32 : i32, i32
  }
}

</mosaic_0001>

<bundles_post_ra>
// kernel: dqn_forward.1
= control target key start
LH: loop header
LB: loop body
LE: loop exit
PB: predicated region body
PF: predicated region fallthrough
CT: control target
= control target key end

     0   :  { %s1002_s24 = smov 0   ;;  %s1140_s0 = inlined_call_operand.vmem [shape: f32[256,32], index: 0, kind: input, shape index: {}]   ;;  %s1141_s1 = inlined_call_operand.vmem [shape: bf16[32,128], index: 1, kind: input, shape index: {}]   ;;  %s1142_s2 = inlined_call_operand.vmem [shape: f32[1,128], index: 2, kind: input, shape index: {}]   ;;  %s1143_s3 = inlined_call_operand.vmem [shape: bf16[128,128], index: 3, kind: input, shape index: {}]   ;;  %s1144_s4 = inlined_call_operand.vmem [shape: f32[1,128], index: 4, kind: input, shape index: {}]   ;;  %s1145_s5 = inlined_call_operand.vmem [shape: bf16[128,128], index: 5, kind: input, shape index: {}]   ;;  %s1146_s6 = inlined_call_operand.vmem [shape: f32[1,128], index: 6, kind: input, shape index: {}]   ;;  %s1147_s7 = inlined_call_operand.vmem [shape: bf16[256,128], index: 7, kind: output, shape index: {}]  }
   0x1 LB: > { %s771_s25 = sadd.s32 4294967295, %s960_s24   ;;  %p775_p0 = scmp.ge.s32.totalorder %s960_s24, 1  ;;  %s960_s24 = sphi %s1002_s24, %s17_s24  }
   0x2   : > { %p238_p1 = scmp.lt.s32.totalorder %s960_s24, 3 }
   0x4   : > { %p239_p2 = pnand %p775_p0, %p238_p1 }
   0x5   : > { %s776_s28 = sshll.u32 (!%p239_p2), %s771_s25, 4 }
   0x6   : > { %242 = sbr.rel (%p239_p2) target bundleno = 562 (0x232), region = 48  ;;  %p271_p3 = scmp.lt.s32.totalorder (!%p239_p2), %s776_s28, 31 }
   0xb   : > { %v863_v0 = vld [vmem:[%s1141_s1 + $0x8] sm:$0xff]  ;;  %v862_v1 = vld [vmem:[%s1141_s1] sm:$0xff]  ;;  %s1149_s28 = smov (!%p271_p3, %s776_s28), 31  ;;  %vm327_vm0 = vcmask 261120   ;;  %v871_v17 = vld [vmem:[%s1143_s3 + $0x38] sm:$0xff] }
   0xc   : > { %358 = vmatpush.bf16.msra.mxu0 %v863_v0  ;;  %s777_s8 = sshll.u32 %s1149_s28, 3  ;;  %493 = vmatpush.bf16.msra.mxu1 %v871_v17  ;;  %v870_v21 = vld [vmem:[%s1143_s3 + $0x30] sm:$0xff]  ;;  %v869_v22 = vld [vmem:[%s1143_s3 + $0x28] sm:$0xff]  ;;  %v868_v23 = vld [vmem:[%s1143_s3 + $0x20] sm:$0xff] }
   0xd   : > { %s1022_s11 = scalar_lea.vmem %s1140_s0, %s777_s8  ;;  %927 = vmatpush.bf16.msra.mxu3 %v871_v17  ;;  %v867_v26 = vld [vmem:[%s1143_s3 + $0x18] sm:$0xff]  ;;  %v866_v28 = vld [vmem:[%s1143_s3 + $0x10] sm:$0xff]  ;;  %v865_v29 = vld [vmem:[%s1143_s3 + $0x8] sm:$0xff]  ;;  %s779_s8 = sshll.u32 %s1149_s28, 2 }
   0xe   : > { %v283_v2 = vld [vmem:[%s1022_s11] sm:$0xff]  ;;  %v284_v3 = vld [vmem:[%s1022_s11 + $0x8] sm:$0xff]  ;;  %v285_v5 = vld [vmem:[%s1022_s11 + $0x10] sm:$0xff] }
   0xf   : > { %v299_v4 = vpack.c.bf16 %v284_v3, %v283_v2  ;;  %v286_v6 = vld [vmem:[%s1022_s11 + $0x18] sm:$0xff]  ;;  %v287_v8 = vld [vmem:[%s1022_s11 + $0x20] sm:$0xff]  ;;  %v288_v9 = vld [vmem:[%s1022_s11 + $0x28] sm:$0xff] }
  0x10   : > { %359 = vmatpush.bf16.msra.mxu0 %v862_v1  ;;  %v300_v7 = vpack.c.bf16 %v286_v6, %v285_v5  ;;  %v301_v10 = vpack.c.bf16 %v288_v9, %v287_v8  ;;  %v289_v11 = vld [vmem:[%s1022_s11 + $0x30] sm:$0xff]  ;;  %v290_v12 = vld [vmem:[%s1022_s11 + $0x38] sm:$0xff]  ;;  %v291_v14 = vld [vmem:[%s1022_s11 + $0x40] sm:$0xff]  ;;  %494 = vmatpush.bf16.msra.mxu1 %v870_v21 }
  0x11   : > { %v302_v13 = vpack.c.bf16 %v290_v12, %v289_v11  ;;  %v292_v15 = vld [vmem:[%s1022_s11 + $0x48] sm:$0xff]  ;;  %v293_v18 = vld [vmem:[%s1022_s11 + $0x50] sm:$0xff]  ;;  %v294_v19 = vld [vmem:[%s1022_s11 + $0x58] sm:$0xff]  ;;  %928 = vmatpush.bf16.msra.mxu3 %v870_v21 }
  0x12   : > { %v303_v16 = vpack.c.bf16 %v292_v15, %v291_v14  ;;  %v304_v20 = vpack.c.bf16 %v294_v19, %v293_v18  ;;  %v295_v24 = vld [vmem:[%s1022_s11 + $0x60] sm:$0xff]  ;;  %v296_v25 = vld [vmem:[%s1022_s11 + $0x68] sm:$0xff]  ;;  %v297_v31 = vld [vmem:[%s1022_s11 + $0x70] sm:$0xff] }
  0x13   : > { %788 = vmatmul.msk.bf16.vlgmr.msra.gmra.mxu0 %vm327_vm0, %v299_v4  ;;  %v305_v27 = vpack.c.bf16 %v296_v25, %v295_v24  ;;  %v864_v30 = vld [vmem:[%s1143_s3] sm:$0xff]  ;;  %v298_v32 = vld [vmem:[%s1022_s11 + $0x78] sm:$0xff]  ;;  %v878_v14 = vld [vmem:[%s1145_s5 + $0x30] sm:$0xff]  ;;  %s1127_s11 = scalar_lea.vmem %s1147_s7, %s779_s8 }
  0x14   : > { %495 = vmatpush.bf16.msra.mxu1 %v869_v22  ;;  %v306_v33 = vpack.c.bf16 %v298_v32, %v297_v31  ;;  %v1075_v35 = vld [vmem:[%s1142_s2] ss:$0 sm:$0xff]  ;;  %v875_v21 = vld [vmem:[%s1145_s5 + $0x18] sm:$0xff]  ;;  %v874_v25 = vld [vmem:[%s1145_s5 + $0x10] sm:$0xff] }
  0x15   : > { %929 = vmatpush.bf16.msra.mxu3 %v869_v22  ;;  %v876_v17 = vld [vmem:[%s1145_s5 + $0x20] sm:$0xff] }
  0x18   : > { %496 = vmatpush.bf16.msra.mxu1 %v868_v23 }
  0x19   : > { %930 = vmatpush.bf16.msra.mxu3 %v868_v23 }
  0x1c   : > { %497 = vmatpush.bf16.msra.mxu1 %v867_v26 }
  0x1d   : > { %931 = vmatpush.bf16.msra.mxu3 %v867_v26 }
  0x20   : > { %498 = vmatpush.bf16.msra.mxu1 %v866_v28 }
  0x21   : > { %932 = vmatpush.bf16.msra.mxu3 %v866_v28  ;;  %v872_v28 = vld [vmem:[%s1145_s5] sm:$0xff] }
  0x23   : > { %789 = vmatmul.msk.bf16.gmra.mxu0 %vm327_vm0, %v300_v7 }
  0x24   : > { %499 = vmatpush.bf16.msra.mxu1 %v865_v29 }
  0x25   : > { %933 = vmatpush.bf16.msra.mxu3 %v865_v29 }
  0x28   : > { %500 = vmatpush.bf16.msra.mxu1 %v864_v30 }
  0x29   : > { %934 = vmatpush.bf16.msra.mxu3 %v864_v30 }
  0x33   : > { %790 = vmatmul.msk.bf16.gmra.mxu0 %vm327_vm0, %v301_v10  ;;  %v879_v10 = vld [vmem:[%s1145_s5 + $0x38] sm:$0xff] }
  0x34   : > { %634 = vmatpush.bf16.msra.mxu2 %v879_v10  ;;  %935 = vmatpush.bf16.msrb.mxu3 %v879_v10 }
  0x38   : > { %635 = vmatpush.bf16.msra.mxu2 %v878_v14  ;;  %936 = vmatpush.bf16.msrb.mxu3 %v878_v14 }
  0x43   : > { %791 = vmatmul.msk.bf16.gmra.mxu0 %vm327_vm0, %v302_v13 }
  0x53   : > { %792 = vmatmul.msk.bf16.gmra.mxu0 %vm327_vm0, %v303_v16  ;;  %v877_v16 = vld [vmem:[%s1145_s5 + $0x28] sm:$0xff] }
  0x54   : > { %636 = vmatpush.bf16.msra.mxu2 %v877_v16  ;;  %937 = vmatpush.bf16.msrb.mxu3 %v877_v16 }
  0x58   : > { %637 = vmatpush.bf16.msra.mxu2 %v876_v17  ;;  %938 = vmatpush.bf16.msrb.mxu3 %v876_v17 }
  0x5c   : > { %638 = vmatpush.bf16.msra.mxu2 %v875_v21  ;;  %939 = vmatpush.bf16.msrb.mxu3 %v875_v21 }
  0x60   : > { %639 = vmatpush.bf16.msra.mxu2 %v874_v25  ;;  %940 = vmatpush.bf16.msrb.mxu3 %v874_v25 }
  0x63   : > { %793 = vmatmul.msk.bf16.gmra.mxu0 %vm327_vm0, %v304_v20 }
  0x73   : > { %794 = vmatmul.msk.bf16.gmra.mxu0 %vm327_vm0, %v305_v27  ;;  %v873_v27 = vld [vmem:[%s1145_s5 + $0x8] sm:$0xff] }
  0x74   : > { %640 = vmatpush.bf16.msra.mxu2 %v873_v27  ;;  %941 = vmatpush.bf16.msrb.mxu3 %v873_v27 }
  0x78   : > { %641 = vmatpush.bf16.msra.mxu2 %v872_v28  ;;  %942 = vmatpush.bf16.msrb.mxu3 %v872_v28 }
  0x83   : > { %795 = vmatmul.msk.bf16.gmra.mxu0 %vm327_vm0, %v306_v33 }
  0x90   : > { %v361_v34 = vpop.f32.mrf.mxu0 }
  0x91   : > { %v362_v36 = vadd.f32 %v1075_v35, %v361_v34 }
  0x93   : > { %v401_v39 = vmax.f32 %v362_v36, 0.0 }
  0x98   : > { %v363_v37 = vpop.f32.mrf.mxu0 }
  0x99   : > { %v364_v38 = vadd.f32 %v1075_v35, %v363_v37  ;;  %v952_v37 = vld [vmem:[%s1144_s4] ss:$0 sm:$0xff] }
  0x9b   : > { %v402_v40 = vmax.f32 %v364_v38, 0.0 }
  0x9d   : > { %v417_v41 = vpack.c.bf16 %v402_v40, %v401_v39 }
  0x9f   : > { %501 = vmatmul.bf16.vlgmr.msra.gmra.mxu1 %v417_v41 }
  0xa0   : > { %v366_v42 = vpop.f32.mrf.mxu0 }
  0xa1   : > { %v367_v43 = vadd.f32 %v1075_v35, %v366_v42 }
  0xa3   : > { %v403_v46 = vmax.f32 %v367_v43, 0.0 }
  0xa8   : > { %v368_v44 = vpop.f32.mrf.mxu0 }
  0xa9   : > { %v369_v45 = vadd.f32 %v1075_v35, %v368_v44 }
  0xab   : > { %v404_v47 = vmax.f32 %v369_v45, 0.0 }
  0xad   : > { %v418_v48 = vpack.c.bf16 %v404_v47, %v403_v46 }
  0xaf   : > { %506 = vmatmul.bf16.gmra.mxu1 %v418_v48 }
  0xb0   : > { %v371_v49 = vpop.f32.mrf.mxu0 }
  0xb1   : > { %v372_v50 = vadd.f32 %v1075_v35, %v371_v49 }
  0xb3   : > { %v405_v53 = vmax.f32 %v372_v50, 0.0 }
  0xb8   : > { %v373_v51 = vpop.f32.mrf.mxu0 }
  0xb9   : > { %v374_v52 = vadd.f32 %v1075_v35, %v373_v51 }
  0xbb   : > { %v406_v54 = vmax.f32 %v374_v52, 0.0 }
  0xbd   : > { %v419_v55 = vpack.c.bf16 %v406_v54, %v405_v53 }
  0xbf   : > { %511 = vmatmul.bf16.gmra.mxu1 %v419_v55 }
  0xc0   : > { %v376_v56 = vpop.f32.mrf.mxu0 }
  0xc1   : > { %v377_v57 = vadd.f32 %v1075_v35, %v376_v56 }
  0xc3   : > { %v407_v60 = vmax.f32 %v377_v57, 0.0 }
  0xc8   : > { %v378_v58 = vpop.f32.mrf.mxu0 }
  0xc9   : > { %v379_v59 = vadd.f32 %v1075_v35, %v378_v58 }
  0xcb   : > { %v408_v61 = vmax.f32 %v379_v59, 0.0 }
  0xcd   : > { %v420_v62 = vpack.c.bf16 %v408_v61, %v407_v60 }
  0xcf   : > { %516 = vmatmul.bf16.gmra.mxu1 %v420_v62 }
  0xd0   : > { %v381_v63 = vpop.f32.mrf.mxu0 }
  0xd1   : > { %v382_v0 = vadd.f32 %v1075_v35, %v381_v63 }
  0xd3   : > { %v409_v3 = vmax.f32 %v382_v0, 0.0 }
  0xd8   : > { %v383_v1 = vpop.f32.mrf.mxu0 }
  0xd9   : > { %v384_v2 = vadd.f32 %v1075_v35, %v383_v1 }
  0xdb   : > { %v410_v4 = vmax.f32 %v384_v2, 0.0 }
  0xdd   : > { %v421_v5 = vpack.c.bf16 %v410_v4, %v409_v3 }
  0xdf   : > { %521 = vmatmul.bf16.gmra.mxu1 %v421_v5 }
  0xe0   : > { %v386_v6 = vpop.f32.mrf.mxu0 }
  0xe1   : > { %v387_v7 = vadd.f32 %v1075_v35, %v386_v6 }
  0xe3   : > { %v411_v11 = vmax.f32 %v387_v7, 0.0 }
  0xe8   : > { %v388_v8 = vpop.f32.mrf.mxu0 }
  0xe9   : > { %v389_v9 = vadd.f32 %v1075_v35, %v388_v8 }
  0xeb   : > { %v412_v12 = vmax.f32 %v389_v9, 0.0 }
  0xed   : > { %v422_v13 = vpack.c.bf16 %v412_v12, %v411_v11 }
  0xef   : > { %526 = vmatmul.bf16.gmra.mxu1 %v422_v13 }
  0xf0   : > { %v391_v15 = vpop.f32.mrf.mxu0 }
  0xf1   : > { %v392_v18 = vadd.f32 %v1075_v35, %v391_v15 }
  0xf3   : > { %v413_v22 = vmax.f32 %v392_v18, 0.0 }
  0xf8   : > { %v393_v19 = vpop.f32.mrf.mxu0 }
  0xf9   : > { %v394_v20 = vadd.f32 %v1075_v35, %v393_v19 }
  0xfb   : > { %v414_v23 = vmax.f32 %v394_v20, 0.0 }
  0xfd   : > { %v423_v24 = vpack.c.bf16 %v414_v23, %v413_v22 }
  0xff   : > { %531 = vmatmul.bf16.vlgmr.msra.gmra.mxu3 %v423_v24 }
 0x100   : > { %v396_v26 = vpop.f32.mrf.mxu0 }
 0x101   : > { %v397_v29 = vadd.f32 %v1075_v35, %v396_v26 }
 0x103   : > { %v415_v32 = vmax.f32 %v397_v29, 0.0  ;;  %v953_v29 = vld [vmem:[%s1146_s6] ss:$0 sm:$0xff] }
 0x108   : > { %v398_v30 = vpop.f32.mrf.mxu0 }
 0x109   : > { %v399_v31 = vadd.f32 %v1075_v35, %v398_v30 }
 0x10b   : > { %v416_v33 = vmax.f32 %v399_v31, 0.0 }
 0x10d   : > { %v424_v34 = vpack.c.bf16 %v416_v33, %v415_v32 }
 0x10f   : > { %536 = vmatmul.bf16.gmra.mxu3 %v424_v34 }
 0x11c   : > { %v502_v36 = vpop.f32.mrf.mxu1 }
 0x11d   : > { %v503_v38 = vadd.f32 %v952_v37, %v502_v36 }
 0x11f   : > { %v542_v41 = vmax.f32 %v503_v38, 0.0 }
 0x124   : > { %v504_v39 = vpop.f32.mrf.mxu1 }
 0x125   : > { %v505_v40 = vadd.f32 %v952_v37, %v504_v39 }
 0x127   : > { %v543_v42 = vmax.f32 %v505_v40, 0.0 }
 0x129   : > { %v558_v43 = vpack.c.bf16 %v543_v42, %v542_v41 }
 0x12b   : > { %642 = vmatmul.bf16.vlgmr.msra.gmra.mxu2 %v558_v43 }
 0x12c   : > { %v507_v44 = vpop.f32.mrf.mxu1 }
 0x12d   : > { %v508_v45 = vadd.f32 %v952_v37, %v507_v44 }
 0x12f   : > { %v544_v47 = vmax.f32 %v508_v45, 0.0 }
 0x134   : > { %v509_v46 = vpop.f32.mrf.mxu1 }
 0x135   : > { %v510_v35 = vadd.f32 %v952_v37, %v509_v46 }
 0x137   : > { %v545_v48 = vmax.f32 %v510_v35, 0.0 }
 0x139   : > { %v559_v49 = vpack.c.bf16 %v545_v48, %v544_v47 }
 0x13b   : > { %647 = vmatmul.bf16.gmra.mxu2 %v559_v49 }
 0x13c   : > { %v512_v50 = vpop.f32.mrf.mxu1 }
 0x13d   : > { %v513_v51 = vadd.f32 %v952_v37, %v512_v50 }
 0x13f   : > { %v546_v54 = vmax.f32 %v513_v51, 0.0 }
 0x144   : > { %v514_v52 = vpop.f32.mrf.mxu1 }
 0x145   : > { %v515_v53 = vadd.f32 %v952_v37, %v514_v52 }
 0x147   : > { %v547_v55 = vmax.f32 %v515_v53, 0.0 }
 0x149   : > { %v560_v56 = vpack.c.bf16 %v547_v55, %v546_v54 }
 0x14b   : > { %652 = vmatmul.bf16.gmra.mxu2 %v560_v56 }
 0x14c   : > { %v517_v57 = vpop.f32.mrf.mxu1 }
 0x14d   : > { %v518_v58 = vadd.f32 %v952_v37, %v517_v57 }
 0x14f   : > { %v548_v61 = vmax.f32 %v518_v58, 0.0 }
 0x154   : > { %v519_v59 = vpop.f32.mrf.mxu1 }
 0x155   : > { %v520_v60 = vadd.f32 %v952_v37, %v519_v59 }
 0x157   : > { %v549_v62 = vmax.f32 %v520_v60, 0.0 }
 0x159   : > { %v561_v63 = vpack.c.bf16 %v549_v62, %v548_v61 }
 0x15b   : > { %657 = vmatmul.bf16.gmra.mxu2 %v561_v63 }
 0x15c   : > { %v522_v0 = vpop.f32.mrf.mxu1 }
 0x15d   : > { %v523_v1 = vadd.f32 %v952_v37, %v522_v0 }
 0x15f   : > { %v550_v4 = vmax.f32 %v523_v1, 0.0 }
 0x164   : > { %v524_v2 = vpop.f32.mrf.mxu1 }
 0x165   : > { %v525_v3 = vadd.f32 %v952_v37, %v524_v2 }
 0x167   : > { %v551_v5 = vmax.f32 %v525_v3, 0.0 }
 0x169   : > { %v562_v6 = vpack.c.bf16 %v551_v5, %v550_v4 }
 0x16b   : > { %662 = vmatmul.bf16.gmra.mxu2 %v562_v6 }
 0x16c   : > { %v527_v7 = vpop.f32.mrf.mxu1 }
 0x16d   : > { %v528_v8 = vadd.f32 %v952_v37, %v527_v7 }
 0x16f   : > { %v552_v11 = vmax.f32 %v528_v8, 0.0 }
 0x174   : > { %v529_v9 = vpop.f32.mrf.mxu1 }
 0x175   : > { %v530_v10 = vadd.f32 %v952_v37, %v529_v9 }
 0x177   : > { %v553_v12 = vmax.f32 %v530_v10, 0.0 }
 0x179   : > { %v563_v13 = vpack.c.bf16 %v553_v12, %v552_v11 }
 0x17b   : > { %667 = vmatmul.bf16.gmra.mxu2 %v563_v13 }
 0x182   : > { %v532_v14 = vpop.f32.mrf.mxu3 }
 0x183   : > { %v533_v15 = vadd.f32 %v952_v37, %v532_v14 }
 0x185   : > { %v554_v18 = vmax.f32 %v533_v15, 0.0 }
 0x18a   : > { %v534_v16 = vpop.f32.mrf.mxu3 }
 0x18b   : > { %v535_v17 = vadd.f32 %v952_v37, %v534_v16 }
 0x18d   : > { %v555_v19 = vmax.f32 %v535_v17, 0.0 }
 0x18f   : > { %v564_v20 = vpack.c.bf16 %v555_v19, %v554_v18 }
 0x191   : > { %672 = vmatmul.bf16.vlgmr.msrb.gmra.mxu3 %v564_v20 }
 0x192   : > { %v537_v21 = vpop.f32.mrf.mxu3 }
 0x193   : > { %v538_v22 = vadd.f32 %v952_v37, %v537_v21 }
 0x195   : > { %v556_v25 = vmax.f32 %v538_v22, 0.0 }
 0x19a   : > { %v539_v23 = vpop.f32.mrf.mxu3 }
 0x19b   : > { %v540_v24 = vadd.f32 %v952_v37, %v539_v23 }
 0x19d   : > { %v557_v26 = vmax.f32 %v540_v24, 0.0 }
 0x19f   : > { %v565_v27 = vpack.c.bf16 %v557_v26, %v556_v25 }
 0x1a1   : > { %677 = vmatmul.bf16.gmra.mxu3 %v565_v27 }
 0x1ae   : > { %v643_v28 = vpop.f32.mrf.mxu2 }
 0x1af   : > { %v644_v31 = vadd.f32 %v953_v29, %v643_v28 }
 0x1b6   : > { %v645_v30 = vpop.f32.mrf.mxu2 }
 0x1b7   : > { %v646_v32 = vadd.f32 %v953_v29, %v645_v30 }
 0x1b9   : > { %v883_v33 = vpack.c.bf16 %v646_v32, %v644_v31 }
 0x1bb   : > { %884 = vst [vmem:[%s1127_s11] sm:$0xff] %v883_v33  }
 0x1be   : > { %v648_v34 = vpop.f32.mrf.mxu2 }
 0x1bf   : > { %v649_v37 = vadd.f32 %v953_v29, %v648_v34 }
 0x1c6   : > { %v650_v36 = vpop.f32.mrf.mxu2 }
 0x1c7   : > { %v651_v38 = vadd.f32 %v953_v29, %v650_v36 }
 0x1c9   : > { %v888_v39 = vpack.c.bf16 %v651_v38, %v649_v37 }
 0x1cb   : > { %920 = vst [vmem:[%s1127_s11 + $0x8] sm:$0xff] %v888_v39  }
 0x1ce   : > { %v653_v40 = vpop.f32.mrf.mxu2 }
 0x1cf   : > { %v654_v42 = vadd.f32 %v953_v29, %v653_v40 }
 0x1d6   : > { %v655_v41 = vpop.f32.mrf.mxu2 }
 0x1d7   : > { %v656_v43 = vadd.f32 %v953_v29, %v655_v41 }
 0x1d9   : > { %v893_v44 = vpack.c.bf16 %v656_v43, %v654_v42 }
 0x1db   : > { %921 = vst [vmem:[%s1127_s11 + $0x10] sm:$0xff] %v893_v44  }
 0x1de   : > { %v658_v45 = vpop.f32.mrf.mxu2 }
 0x1df   : > { %v659_v35 = vadd.f32 %v953_v29, %v658_v45 }
 0x1e6   : > { %v660_v46 = vpop.f32.mrf.mxu2 }
 0x1e7   : > { %v661_v47 = vadd.f32 %v953_v29, %v660_v46 }
 0x1e9   : > { %v898_v48 = vpack.c.bf16 %v661_v47, %v659_v35 }
 0x1eb   : > { %922 = vst [vmem:[%s1127_s11 + $0x18] sm:$0xff] %v898_v48  }
 0x1ee   : > { %v663_v49 = vpop.f32.mrf.mxu2 }
 0x1ef   : > { %v664_v51 = vadd.f32 %v953_v29, %v663_v49 }
 0x1f6   : > { %v665_v50 = vpop.f32.mrf.mxu2 }
 0x1f7   : > { %v666_v52 = vadd.f32 %v953_v29, %v665_v50 }
 0x1f9   : > { %v903_v53 = vpack.c.bf16 %v666_v52, %v664_v51 }
 0x1fb   : > { %923 = vst [vmem:[%s1127_s11 + $0x20] sm:$0xff] %v903_v53  }
 0x1fe   : > { %v668_v54 = vpop.f32.mrf.mxu2 }
 0x1ff   : > { %v669_v56 = vadd.f32 %v953_v29, %v668_v54 }
 0x206   : > { %v670_v55 = vpop.f32.mrf.mxu2 }
 0x207   : > { %v671_v57 = vadd.f32 %v953_v29, %v670_v55 }
 0x209   : > { %v908_v58 = vpack.c.bf16 %v671_v57, %v669_v56 }
 0x20b   : > { %924 = vst [vmem:[%s1127_s11 + $0x28] sm:$0xff] %v908_v58  }
 0x214   : > { %v673_v59 = vpop.f32.mrf.mxu3 }
 0x215   : > { %v674_v61 = vadd.f32 %v953_v29, %v673_v59 }
 0x21c   : > { %v675_v60 = vpop.f32.mrf.mxu3 }
 0x21d   : > { %v676_v62 = vadd.f32 %v953_v29, %v675_v60 }
 0x21f   : > { %v913_v63 = vpack.c.bf16 %v676_v62, %v674_v61 }
 0x221   : > { %925 = vst [vmem:[%s1127_s11 + $0x30] sm:$0xff] %v913_v63  }
 0x224   : > { %v678_v0 = vpop.f32.mrf.mxu3 }
 0x225   : > { %v679_v2 = vadd.f32 %v953_v29, %v678_v0 }
 0x22c   : > { %v680_v1 = vpop.f32.mrf.mxu3 }
 0x22d   : > { %v681_v3 = vadd.f32 %v953_v29, %v680_v1 }
 0x22f   : > { %v918_v4 = vpack.c.bf16 %v681_v3, %v679_v2 }
 0x231   : > { %926 = vst [vmem:[%s1127_s11 + $0x38] sm:$0xff] %v918_v4  }
 0x232 PF: > { %s17_s24 = sadd.s32 1, %s960_s24  }
 0x233   : > { %p14_p4 = scmp.ge.s32.totalorder %s17_s24, 4  }
 0x235   :  { %16 = sbr.rel (!%p14_p4) target bundleno = 1 (0x1), region = 78 }

</bundles_post_ra>
